<compile_context>
chip_gen: v7x
topology: tpu7x:2x2x1
jax: 0.10.0
libtpu: 0.0.40
codegen_flags: <defaults>
</compile_context>

<pallas_src>
import math
import numbers
import numpy as np
from collections.abc import Sequence

import jax
import jax.numpy as jnp
from jax.experimental import pallas as pl
from jax.experimental.pallas import tpu as pltpu


# ----------------------------------------------------------------------------
# Pallas kernel: channel-batched separable resize   out = Wy @ X @ Wxc
# ----------------------------------------------------------------------------
def _resize_kernel(wy_ref, x_ref, wxc_ref, o_ref):
    # wy_ref:  (row_tile, H)        row-interp weights (crop rows baked in)
    # x_ref:   (H, W*C)             full image, flattened HWC (lane-dense)
    # wxc_ref: (W*C, out_w*C)       col-interp weights, kron-expanded over C
    # o_ref:   (row_tile, out_w*C)  flattened HWC output tile (lane-dense)
    x = x_ref[...].astype(jnp.float32)          # cast in-kernel (native-dtype DMA)
    tmp = jnp.dot(wy_ref[...], x, preferred_element_type=jnp.float32)
    o_ref[...] = jnp.dot(tmp, wxc_ref[...],
                         preferred_element_type=jnp.float32).astype(o_ref.dtype)


def _row_tile(out_h):
    """Output-row tile: multiple of 8 (or full extent), >=2 tiles when possible
    so both TensorCores (v7x megacore) get work, and <=512 rows to bound VMEM."""
    if out_h <= 8:
        return out_h
    half = -(-out_h // 2)            # ceil(out_h / 2)
    tile = ((half + 7) // 8) * 8     # round up to a multiple of 8
    return min(tile, 512)


def _pallas_resize(img_flat, wy, wxc):
    """img_flat: (H, W*C) any dtype; wy: (out_h, H) f32; wxc: (W*C, out_w*C) f32
    -> (out_h, out_w*C) f32."""
    H, WC = img_flat.shape
    out_h = wy.shape[0]
    out_wc = wxc.shape[1]
    row_tile = _row_tile(out_h)
    n_tiles = pl.cdiv(out_h, row_tile)

    # Explicit VMEM budget: double-buffered block footprint + margin.
    # TODO(synk): very large images (input block > ~40 MiB) would need a
    # K-reduction grid axis over H; not needed for typical image sizes.
    in_item = img_flat.dtype.itemsize
    per_step = (row_tile * H * 4 + H * WC * in_item
                + WC * out_wc * 4 + row_tile * out_wc * 4)
    vmem_limit = int(min(max(2 * per_step + (2 << 20), 16 << 20), 56 << 20))

    return pl.pallas_call(
        _resize_kernel,
        out_shape=jax.ShapeDtypeStruct((out_h, out_wc), jnp.float32),
        grid=(n_tiles,),
        in_specs=[
            pl.BlockSpec((row_tile, H), lambda r: (r, 0)),   # Wy row tile
            pl.BlockSpec((H, WC), lambda r: (0, 0)),         # full image (resident)
            pl.BlockSpec((WC, out_wc), lambda r: (0, 0)),    # Wxc (resident)
        ],
        out_specs=pl.BlockSpec((row_tile, out_wc), lambda r: (r, 0)),
        compiler_params=pltpu.CompilerParams(
            dimension_semantics=("parallel",),
            vmem_limit_bytes=vmem_limit,
        ),
    )(wy, img_flat, wxc)


# jit wrapper: shape-keyed compile cache, no per-call retracing overhead.
# (Crop params never appear as traced values — they are baked into wy/wxc —
#  so varying random crops never trigger recompiles.)
_pallas_resize_jit = jax.jit(_pallas_resize)


# ----------------------------------------------------------------------------
# Interpolation weight matrices (host-side; crop window baked into the matrix
# so kernel shapes stay static across random crops)
# ----------------------------------------------------------------------------
def _bilinear_weights(full, offset, crop, dst):
    """cv2-style bilinear (half-pixel centers, clamped) of a length-`crop`
    window starting at `offset` inside a length-`full` axis -> (dst, full)."""
    scale = crop / dst
    d = np.arange(dst, dtype=np.float64)
    f = np.maximum((d + 0.5) * scale - 0.5, 0.0)
    i0 = np.floor(f).astype(np.int64)
    frac = (f - i0).astype(np.float32)
    i0 = np.clip(i0, 0, crop - 1)
    i1 = np.clip(i0 + 1, 0, crop - 1)
    w = np.zeros((dst, full), dtype=np.float32)
    np.add.at(w, (np.arange(dst), offset + i0), 1.0 - frac)
    np.add.at(w, (np.arange(dst), offset + i1), frac)
    return w


def _nearest_weights(full, offset, crop, dst):
    """cv2 INTER_NEAREST of the crop window as a one-hot (dst, full) matrix."""
    scale = crop / dst
    idx = np.minimum(np.floor(np.arange(dst) * scale), crop - 1).astype(np.int64)
    w = np.zeros((dst, full), dtype=np.float32)
    w[np.arange(dst), offset + idx] = 1.0
    return w


# ----------------------------------------------------------------------------
# Module-equivalent wrapper
# ----------------------------------------------------------------------------
def _setup_size(size, error_msg):
    if isinstance(size, numbers.Number):
        return (int(size), int(size))
    if isinstance(size, Sequence) and len(size) == 1:
        return (size[0], size[0])
    if len(size) != 2:
        raise ValueError(error_msg)
    return size


class RandomResizedCropPallas:
    def __init__(self, size, scale=(0.08, 1.0), ratio=(3.0 / 4.0, 4.0 / 3.0), seed=0):
        self.size = _setup_size(size, 'Please provide only two dimensions (h, w) for size.')
        if not isinstance(scale, Sequence):
            raise TypeError('Scale should be a sequence')
        if not isinstance(ratio, Sequence):
            raise TypeError('Ratio should be a sequence')
        self.scale = scale
        self.ratio = ratio
        # Deterministic host-side RNG replacing torch.empty().uniform_ / torch.randint
        self._rng = np.random.default_rng(seed)
        self._last_params = None

    def get_params(self, height, width):
        area = height * width
        log_ratio = (math.log(self.ratio[0]), math.log(self.ratio[1]))
        for _ in range(10):
            target_area = area * float(self._rng.uniform(self.scale[0], self.scale[1]))
            aspect_ratio = math.exp(float(self._rng.uniform(log_ratio[0], log_ratio[1])))
            w = int(round(math.sqrt(target_area * aspect_ratio)))
            h = int(round(math.sqrt(target_area / aspect_ratio)))
            if 0 < w <= width and 0 < h <= height:
                i = int(self._rng.integers(0, height - h + 1))
                j = int(self._rng.integers(0, width - w + 1))
                return i, j, h, w
        # Fallback: central crop
        in_ratio = float(width) / float(height)
        if in_ratio < min(self.ratio):
            w = width
            h = int(round(w / min(self.ratio)))
        elif in_ratio > max(self.ratio):
            h = height
            w = int(round(h * max(self.ratio)))
        else:
            w = width
            h = height
        i = (height - h) // 2
        j = (width - w) // 2
        return i, j, h, w

    def _crop_resize(self, img_hwc, i, j, h, w, interpolation):
        squeeze_channel = (img_hwc.ndim == 2)
        if squeeze_channel:
            img_hwc = img_hwc[..., None]
        H, W, C = img_hwc.shape
        # mmcv.imresize interprets size as (w, h); mirror that here.
        out_w, out_h = self.size

        wfun = _bilinear_weights if interpolation == 'bilinear' else _nearest_weights
        wy = wfun(H, i, h, out_h)                        # (out_h, H)  crop rows baked in
        wx = wfun(W, j, w, out_w).T                      # (W, out_w)  crop cols baked in
        wxc = np.kron(wx, np.eye(C, dtype=np.float32))   # (W*C, out_w*C) block-diag over C

        # No host-side crop slice, no transposes, no host dtype cast: the full
        # HWC image is viewed as a lane-dense (H, W*C) matrix.
        out_flat = _pallas_resize_jit(img_hwc.reshape(H, W * C),
                                      jnp.asarray(wy), jnp.asarray(wxc))
        out = out_flat.reshape(out_h, out_w, C)
        if squeeze_channel:
            out = out[..., 0]
        # TODO(synk): cv2/mmcv uint8 rounding and exact pixel-center quirks are
        # not reproduced bit-exactly; output stays float32.
        return out

    def __call__(self, results):
        img = results['img']
        i, j, h, w = self.get_params(int(img.shape[0]), int(img.shape[1]))
        self._last_params = (i, j, h, w)
        for key in ['img', 'img_mask']:
            if key not in results:
                continue
            interp = 'nearest' if 'mask' in key else 'bilinear'
            out = self._crop_resize(results[key], i, j, h, w, interp)
            results[key] = out
            # Matches the original module exactly: img_shape/pad_shape are
            # (re)assigned per key inside the loop.
            results['img_shape'] = tuple(out.shape)
            results['pad_shape'] = tuple(out.shape)
        return results


# ----------------------------------------------------------------------------
if __name__ == "__main__":
    key = jax.random.PRNGKey(0)
    k_img, k_mask = jax.random.split(key)

    H, W, C = 16, 16, 4
    img = jax.random.uniform(k_img, (H, W, C), dtype=jnp.float32) * 255.0      # HWC image
    img_mask = (jax.random.uniform(k_mask, (H, W)) > 0.5).astype(jnp.float32)  # HxW mask

    results = {'img': img, 'img_mask': img_mask}

    transform = RandomResizedCropPallas(size=8)
    out = transform(results)

    jax.block_until_ready(out['img'])
    jax.block_until_ready(out['img_mask'])

    assert out['img'].shape == (8, 8, C), out['img'].shape
    assert out['img_mask'].shape == (8, 8), out['img_mask'].shape

    # Correctness check (outside the hot path): rebuild the crop-baked weights
    # for the sampled crop and compare the Pallas result against a float64
    # host reference of the same separable resize.
    i, j, h, w = transform._last_params
    wy = _bilinear_weights(H, i, h, 8).astype(np.float64)
    wx = _bilinear_weights(W, j, w, 8).T.astype(np.float64)
    wxc = np.kron(wx, np.eye(C, dtype=np.float64))
    ref = (wy @ np.asarray(img, dtype=np.float64).reshape(H, W * C) @ wxc).reshape(8, 8, C)
    np.testing.assert_allclose(np.asarray(out['img']), ref, rtol=1e-4, atol=1e-3)

    # Nearest-neighbor mask check: output values must be drawn from {0, 1}.
    mask_vals = np.unique(np.asarray(out['img_mask']))
    assert np.all(np.isin(mask_vals, [0.0, 1.0])), mask_vals

    print("KERNEL_OK")
</pallas_src>

<mosaic_0001>
module attributes {stable_mosaic.version = 11 : i64} {
  func.func @_resize_kernel(%arg0: i32, %arg1: memref<8x16xf32, #tpu.memory_space<vmem>>, %arg2: memref<16x64xf32, #tpu.memory_space<vmem>>, %arg3: memref<64x32xf32, #tpu.memory_space<vmem>>, %arg4: memref<8x32xf32, #tpu.memory_space<vmem>>) attributes {dimension_semantics = [#tpu.dimension_semantics<parallel>], iteration_bounds = array<i64: 1>, scalar_prefetch = 0 : i64, scratch_operands = 0 : i64, tpu.core_type = #tpu.core_type<tc>, window_params = [{transform_indices = @transform_0, window_bounds = array<i64: 8, 16>}, {pipeline_mode = #tpu.pipeline_mode<synchronous>, transform_indices = @transform_1, window_bounds = array<i64: 16, 64>}, {pipeline_mode = #tpu.pipeline_mode<synchronous>, transform_indices = @transform_2, window_bounds = array<i64: 64, 32>}, {transform_indices = @transform_3, window_bounds = array<i64: 8, 32>}]} {
    %c0 = arith.constant 0 : index
    %c0_0 = arith.constant 0 : index
    %0 = vector.load %arg2[%c0, %c0_0] : memref<16x64xf32, #tpu.memory_space<vmem>>, vector<16x64xf32>
    %c0_1 = arith.constant 0 : index
    %c0_2 = arith.constant 0 : index
    %1 = vector.load %arg1[%c0_1, %c0_2] : memref<8x16xf32, #tpu.memory_space<vmem>>, vector<8x16xf32>
    %cst = arith.constant dense<0.000000e+00> : vector<8x64xf32>
    %2 = tpu.matmul %1, %0, %cst {dimension_numbers = #tpu.dot_dimension_numbers<[1], [0], [0], [1], [0, 0, 1, 1], [], []>} : vector<8x16xf32>, vector<16x64xf32>, vector<8x64xf32> -> vector<8x64xf32>
    %c0_3 = arith.constant 0 : index
    %c0_4 = arith.constant 0 : index
    %3 = vector.load %arg3[%c0_3, %c0_4] : memref<64x32xf32, #tpu.memory_space<vmem>>, vector<64x32xf32>
    %cst_5 = arith.constant dense<0.000000e+00> : vector<8x32xf32>
    %4 = tpu.matmul %2, %3, %cst_5 {dimension_numbers = #tpu.dot_dimension_numbers<[1], [0], [0], [1], [0, 0, 1, 1], [], []>} : vector<8x64xf32>, vector<64x32xf32>, vector<8x32xf32> -> vector<8x32xf32>
    %c0_6 = arith.constant 0 : index
    %c0_7 = arith.constant 0 : index
    %5 = vector.load %arg4[%c0_6, %c0_7] : memref<8x32xf32, #tpu.memory_space<vmem>>, vector<8x32xf32>
    tpu.vector_store %arg4[%c0_6, %c0_7], %4 {strides = array<i32>} : memref<8x32xf32, #tpu.memory_space<vmem>>, vector<8x32xf32>,
    return
  }
  func.func @transform_0(%arg0: i32) -> (i32, i32) {
    %c0_i32 = arith.constant 0 : i32
    %c0_i32_0 = arith.constant 0 : i32
    return %arg0, %c0_i32 : i32, i32
  }
  func.func @transform_1(%arg0: i32) -> (i32, i32) {
    %c0_i32 = arith.constant 0 : i32
    %c0_i32_0 = arith.constant 0 : i32
    %c0_i32_1 = arith.constant 0 : i32
    return %c0_i32, %c0_i32_0 : i32, i32
  }
  func.func @transform_2(%arg0: i32) -> (i32, i32) {
    %c0_i32 = arith.constant 0 : i32
    %c0_i32_0 = arith.constant 0 : i32
    %c0_i32_1 = arith.constant 0 : i32
    return %c0_i32, %c0_i32_0 : i32, i32
  }
  func.func @transform_3(%arg0: i32) -> (i32, i32) {
    %c0_i32 = arith.constant 0 : i32
    %c0_i32_0 = arith.constant 0 : i32
    return %arg0, %c0_i32 : i32, i32
  }
}

</mosaic_0001>

<bundles_post_ra>
// kernel: _pallas_resize.1
= control target key start
LH: loop header
LB: loop body
LE: loop exit
PB: predicated region body
PF: predicated region fallthrough
CT: control target
= control target key end

     0   :  { %v273_v2 = vmov 0.0|0.0   ;;  %vm274_vm0 = vmmov 0   ;;  %v275_v4 = vmov 0.0   ;;  %vm18_vm1 = vcmask 130048   ;;  %s342_s0 = inlined_call_operand.vmem [shape: f32[8,16], index: 0, kind: input, shape index: {}]   ;;  %s343_s1 = inlined_call_operand.vmem [shape: f32[16,64], index: 1, kind: input, shape index: {}]   ;;  %s344_s2 = inlined_call_operand.vmem [shape: f32[64,32], index: 2, kind: input, shape index: {}]   ;;  %s345_s3 = inlined_call_operand.hbm [shape: f32[8,32], index: 3, kind: output, shape index: {}]  }
   0x1   :  { %v15_v0 = vld [vmem:[%s343_s1] sm:$0xff]  ;;  %v16_v1 = vld [vmem:[%s343_s1 + $0x8] sm:$0xff]  ;;  %230 = vmatprep.subr.bf16.mxu0 %v273_v2  ;;  %208 = vmatprep.mubr.msk.f32.mxu0 %vm274_vm0, %v275_v4  ;;  %v94_v7 = vld [vmem:[%s344_s2 + $0x10] sm:$0xff] }
   0x2   :  { %v231_v3 = vpack.c.bf16 %v16_v1, %v15_v0  ;;  %v92_v5 = vld [vmem:[%s344_s2] sm:$0xff]  ;;  %v93_v6 = vld [vmem:[%s344_s2 + $0x8] sm:$0xff]  ;;  %233 = vmatprep.subr.bf16.mxu1 %v273_v2  ;;  %v95_v9 = vld [vmem:[%s344_s2 + $0x18] sm:$0xff]  ;;  %227 = vmatprep.mubr.msk.f32.mxu1 %vm274_vm0, %v275_v4 }
   0x3   :  { %v234_v8 = vpack.c.bf16 %v93_v6, %v92_v5  ;;  %v17_v10 = vld [vmem:[%s342_s0] sm:$0xff] }
   0x4   :  { %232 = vmatpush3.bf16.msra.mxu0 %v231_v3 }
   0x5   :  { %8 = vsyncpa [#allocation3], 0  ;;  %235 = vmatpush3.bf16.msra.mxu1 %v234_v8  ;;  %v237_v11 = vpack.c.bf16 %v95_v9, %v94_v7  ;;  %v96_v12 = vld [vmem:[%s344_s2 + $0x20] sm:$0xff]  ;;  %v97_v13 = vld [vmem:[%s344_s2 + $0x28] sm:$0xff]  ;;  %vm100_vm2 = vcmask 523264   ;;  %s276_s5 = smov [#allocation2]  }
   0x6   :  { %236 = vmatprep.subr.bf16.mxu1 %v273_v2  ;;  %v240_v14 = vpack.c.bf16 %v97_v13, %v96_v12  ;;  %v98_v15 = vld [vmem:[%s344_s2 + $0x30] sm:$0xff]  ;;  %v99_v16 = vld [vmem:[%s344_s2 + $0x38] sm:$0xff]  ;;  %s182_s6 = sshll.u32 %s276_s5, 4  ;;  %vm174_vm3 = vcmask 261120   ;;  %s183_s6 = int_to_ptr.vmem [resolvable:$true] %s182_s6 }
   0x7   :  { %209 = vmatmul.mubr.msk.f32.vlgmr.msra.gmra.mrb[0].mxu0 %vm18_vm1, %v17_v10  ;;  %v243_v17 = vpack.c.bf16 %v99_v16, %v98_v15  ;;  %s249_s7 = scalar_lea.vmem %s183_s6, 128  ;;  %p254_p1 = scmp.lt.s32.totalorder %s183_s6, %s183_s6 }
   0x8   :  { %p250_p0 = scmp.ne.s32.totalorder %s183_s6, %s249_s7  ;;  %p255_p2 = scmp.lt.s32.totalorder %s249_s7, %s249_s7 }
   0x9   :  { %238 = vmatpush3.bf16.msra.mxu1 %v237_v11 }
   0xa   :  { %239 = vmatprep.subr.bf16.mxu1 %v273_v2  ;;  %p256_p3 = por %p255_p2, %p254_p1 }
   0xc   :  { %p257_p4 = pnand %p256_p3, %p250_p0 }
   0xd   :  { %241 = vmatpush3.bf16.msra.mxu1 %v240_v14 }
   0xe   :  { %242 = vmatprep.subr.bf16.mxu1 %v273_v2 }
  0x11   :  { %244 = vmatpush3.bf16.msra.mxu1 %v243_v17 }
  0xda   :  { %v88_v18 = vpop.f32.mrb[0].mxu0 }
  0xdb   :  { %v210_v19 = vpop.f32.mrb[1].mxu0  ;;  %228 = vmatmul.mubr.msk.f32.vlgmr.msra.gmra.mrb[0].mxu1 %vm100_vm2, %v88_v18 }
 0x1ae   :  { %v170_v20 = vpop.f32.mrb[0].mxu1 }
 0x1af   :  { %175 = vst.msk [vmem:[#allocation2] sm:$0xff] %vm174_vm3, %v170_v20  ;;  %v229_v21 = vpop.f32.mrb[1].mxu1 }
 0x1b0   :  { %260 = shalt.err (!%p257_p4)
}
 0x1b1   :  { %s261_s9 = scalar_lea.hbm %s345_s3, 128 }
 0x1b2   :  { %p262_p5 = scmp.ne.s32.totalorder %s345_s3, %s261_s9  ;;  %p265_p6 = scmp.lt.u32.totalorder %s261_s9, %s345_s3 }
 0x1b4   :  { %p267_p7 = pnand %p265_p6, %p262_p5 }
 0x1b6   :  { %270 = shalt.err (!%p267_p7)
}
 0x1b7   :  { %185 = dma.vmem_to_hbm [thread:$0]  %s183_s6, 128, %s345_s3, [#allocation3]  }
 0x1b8   :  { %271 = dma.done.wait [#allocation3], 128  }
 0x1b9   :  { %272 = vsyncadd [#allocation3], 4294967168 }
 0x1ba   :  { %189 = vsyncpa [#allocation3], 1 }

</bundles_post_ra>
